<compile_context>
chip_gen: v6e
topology: v6e:2x2x1
jax: 0.10.0
libtpu: 0.0.40
codegen_flags: <defaults>
</compile_context>

<pallas_src>
import functools
import math

import jax
import jax.numpy as jnp
from jax.experimental import pallas as pl
from jax.experimental.pallas import tpu as pltpu


def _round_up(n, m):
    return ((n + m - 1) // m) * m


def card_selection_kernel(x_ref, w12_ref, b_ref, w3_ref, out_ref, acc_ref,
                          *, batch, tile_b, need_mask):
    i = pl.program_id(0)

    @pl.when(i == 0)
    def _init():
        acc_ref[...] = jnp.zeros_like(acc_ref)

    # fc1 + ReLU: (tile_b, 32)bf16 @ (32, 128)bf16 -> f32; real h1 in cols 0:64.
    h1 = jnp.dot(x_ref[...], w12_ref[0:32, :],
                 preferred_element_type=jnp.float32)
    h1 = jnp.maximum(h1 + b_ref[0:1, 0:128], 0.0)

    # fc2 + ReLU: (tile_b, 128)bf16 @ (128, 128)bf16 -> f32; real h2 in cols 0:32.
    h2 = jnp.dot(h1.astype(jnp.bfloat16), w12_ref[32:160, :],
                 preferred_element_type=jnp.float32)
    h2 = jnp.maximum(h2 + b_ref[1:2, 0:128], 0.0)

    if need_mask:
        # Zero-padded batch rows must not contribute to the max.  Since h2 >= 0
        # (post-ReLU) and the accumulator starts at 0, replacing padded rows
        # with 0 is exact.
        row = i * tile_b + jax.lax.broadcasted_iota(jnp.int32, h2.shape, 0)
        h2 = jnp.where(row < batch, h2, 0.0)

    # Fold this tile's max into the running (1, 128) accumulator.
    tile_max = jnp.max(h2, axis=0, keepdims=True)
    acc_ref[...] = jnp.maximum(acc_ref[...], tile_max)

    # fc3 only on the final grid step; lane-dense (8, n_pad) store.
    @pl.when(i == pl.num_programs(0) - 1)
    def _finalize():
        pooled = acc_ref[...]                                    # (1, 128) f32
        logits = jnp.dot(pooled.astype(jnp.bfloat16), w3_ref[...],
                         preferred_element_type=jnp.float32)     # (1, n_pad)
        logits = logits + b_ref[2:3, :]
        out_ref[...] = jnp.broadcast_to(logits, out_ref.shape)


@functools.partial(jax.jit, static_argnames=("total_cards", "max_tile_b"))
def card_selection_forward(x, w12, biases, w3p, *, total_cards, max_tile_b=512):
    """x: (batch, 19) f32.  Returns logits of shape (1, total_cards) f32."""
    batch = x.shape[0]
    n_pad = w3p.shape[1]

    tile_b = max_tile_b if batch > max_tile_b else _round_up(batch, 16)
    b_pad = _round_up(batch, tile_b)
    num_tiles = b_pad // tile_b

    # Pad features 19 -> 32 and batch -> b_pad; cast the MXU operand to bf16.
    x_p = jnp.pad(x.astype(jnp.bfloat16), ((0, b_pad - batch), (0, 32 - 19)))

    kernel = functools.partial(
        card_selection_kernel,
        batch=batch, tile_b=tile_b, need_mask=(b_pad != batch))

    out = pl.pallas_call(
        kernel,
        out_shape=jax.ShapeDtypeStruct((8, n_pad), jnp.float32),
        grid_spec=pltpu.PrefetchScalarGridSpec(
            num_scalar_prefetch=0,
            grid=(num_tiles,),
            in_specs=[
                pl.BlockSpec((tile_b, 32), lambda i: (i, 0)),   # x: batch-tiled
                pl.BlockSpec((160, 128), lambda i: (0, 0)),     # w1|w2 slab (bf16)
                pl.BlockSpec((8, n_pad), lambda i: (0, 0)),     # b1/b2/b3 (f32)
                pl.BlockSpec((128, n_pad), lambda i: (0, 0)),   # w3 slab (bf16)
            ],
            out_specs=pl.BlockSpec((8, n_pad), lambda i: (0, 0)),
            scratch_shapes=[pltpu.VMEM((1, 128), jnp.float32)],  # running max
        ),
        compiler_params=pltpu.CompilerParams(
            dimension_semantics=("arbitrary",),        # accumulator across batch
            vmem_limit_bytes=32 * 1024 * 1024,         # safe on v5e/v6e/v7x
        ),
    )(x_p, w12, biases, w3p)

    return out[0:1, :total_cards]


def init_params(key, total_cards):
    """nn.Linear-style init; weights stored as (in_features, out_features)."""
    dims = [(19, 64), (64, 32), (32, total_cards)]
    params = []
    for fan_in, fan_out in dims:
        key, kw, kb = jax.random.split(key, 3)
        bound = 1.0 / math.sqrt(fan_in)
        w = jax.random.uniform(kw, (fan_in, fan_out), jnp.float32, -bound, bound)
        b = jax.random.uniform(kb, (fan_out,), jnp.float32, -bound, bound)
        params += [w, b]
    return tuple(params)


def pack_params(params):
    """One-time packing of the 6 Linear params into 3 padded, lane-dense slabs."""
    w1, b1, w2, b2, w3, b3 = params
    total_cards = w3.shape[1]
    n_pad = _round_up(total_cards, 128)

    w12 = jnp.zeros((160, 128), jnp.float32)
    w12 = w12.at[0:19, 0:64].set(w1)      # fc1 weight (contracting dim padded to 32)
    w12 = w12.at[32:96, 0:32].set(w2)     # fc2 weight (rows 32:160 in the kernel)
    w12 = w12.astype(jnp.bfloat16)

    biases = jnp.zeros((8, n_pad), jnp.float32)
    biases = biases.at[0, 0:64].set(b1)
    biases = biases.at[1, 0:32].set(b2)
    biases = biases.at[2, 0:total_cards].set(b3)

    w3p = jnp.zeros((128, n_pad), jnp.float32)
    w3p = w3p.at[0:32, 0:total_cards].set(w3)
    w3p = w3p.astype(jnp.bfloat16)

    return w12, biases, w3p, total_cards


def reference_forward(x, params):
    """Pure-JAX reference mirroring the kernel's numerics (bf16 MXU operands,
    f32 accumulation and f32 bias/ReLU/max)."""
    w1, b1, w2, b2, w3, b3 = params
    bf = jnp.bfloat16
    h1 = jnp.maximum(jnp.dot(x.astype(bf), w1.astype(bf),
                             preferred_element_type=jnp.float32) + b1, 0.0)
    h2 = jnp.maximum(jnp.dot(h1.astype(bf), w2.astype(bf),
                             preferred_element_type=jnp.float32) + b2, 0.0)
    pooled = jnp.max(h2, axis=0, keepdims=True)
    return jnp.dot(pooled.astype(bf), w3.astype(bf),
                   preferred_element_type=jnp.float32) + b3


if __name__ == "__main__":
    key = jax.random.PRNGKey(0)
    k_x, k_p = jax.random.split(key)

    total_cards = 32
    params = init_params(k_p, total_cards)
    w12, biases, w3p, _ = pack_params(params)

    # Small main example (matches the PyTorch module's tiny shapes).
    batch = 8
    x = jax.random.normal(k_x, (batch, 19), dtype=jnp.float32)
    logits = card_selection_forward(x, w12, biases, w3p, total_cards=total_cards)
    logits = jax.block_until_ready(logits)
    assert logits.shape == (1, total_cards)
    assert jnp.allclose(logits, reference_forward(x, params), atol=2e-3, rtol=2e-3)

    # Padding-correctness check: batch not a multiple of the sublane tile.
    x7 = jax.random.normal(jax.random.PRNGKey(1), (7, 19), dtype=jnp.float32)
    out7 = jax.block_until_ready(
        card_selection_forward(x7, w12, biases, w3p, total_cards=total_cards))
    assert jnp.allclose(out7, reference_forward(x7, params), atol=2e-3, rtol=2e-3)

    # Multi-tile (pipelined grid + running-max accumulator) check.
    xl = jax.random.normal(jax.random.PRNGKey(2), (1100, 19), dtype=jnp.float32)
    outl = jax.block_until_ready(
        card_selection_forward(xl, w12, biases, w3p, total_cards=total_cards))
    assert jnp.allclose(outl, reference_forward(xl, params), atol=2e-3, rtol=2e-3)

    print("KERNEL_OK")
</pallas_src>

<mosaic_0001>
module attributes {stable_mosaic.version = 11 : i64} {
  func.func @card_selection_kernel(%arg0: i32, %arg1: memref<16x32xbf16, #tpu.memory_space<vmem>>, %arg2: memref<160x128xbf16, #tpu.memory_space<vmem>>, %arg3: memref<8x128xf32, #tpu.memory_space<vmem>>, %arg4: memref<128x128xbf16, #tpu.memory_space<vmem>>, %arg5: memref<8x128xf32, #tpu.memory_space<vmem>>, %arg6: memref<1x128xf32, #tpu.memory_space<vmem>>) attributes {dimension_semantics = [#tpu.dimension_semantics<arbitrary>], iteration_bounds = array<i64: 1>, scalar_prefetch = 0 : i64, scratch_operands = 1 : i64, tpu.core_type = #tpu.core_type<tc>, window_params = [{transform_indices = @transform_0, window_bounds = array<i64: 16, 32>}, {pipeline_mode = #tpu.pipeline_mode<synchronous>, transform_indices = @transform_1, window_bounds = array<i64: 160, 128>}, {pipeline_mode = #tpu.pipeline_mode<synchronous>, transform_indices = @transform_2, window_bounds = array<i64: 8, 128>}, {pipeline_mode = #tpu.pipeline_mode<synchronous>, transform_indices = @transform_3, window_bounds = array<i64: 128, 128>}, {pipeline_mode = #tpu.pipeline_mode<synchronous>, transform_indices = @transform_4, window_bounds = array<i64: 8, 128>}]} {
    %c0_i32 = arith.constant 0 : i32
    %0 = arith.cmpi eq, %arg0, %c0_i32 : i32
    %1 = arith.extui %0 : i1 to i32
    %c0_i32_0 = arith.constant 0 : i32
    %2 = arith.cmpi ne, %1, %c0_i32_0 : i32
    scf.if %2 {
      %cst_19 = arith.constant 0.000000e+00 : f32
      %35 = vector.broadcast %cst_19 : f32 to vector<1x128xf32>
      %c0_20 = arith.constant 0 : index
      %c0_21 = arith.constant 0 : index
      %36 = vector.load %arg6[%c0_20, %c0_21] : memref<1x128xf32, #tpu.memory_space<vmem>>, vector<1x128xf32>
      tpu.vector_store %arg6[%c0_20, %c0_21], %35 {strides = array<i32>} : memref<1x128xf32, #tpu.memory_space<vmem>>, vector<1x128xf32>,
    } else {
    }
    %c0 = arith.constant 0 : index
    %c0_1 = arith.constant 0 : index
    %3 = vector.load %arg1[%c0, %c0_1] : memref<16x32xbf16, #tpu.memory_space<vmem>>, vector<16x32xbf16>
    %c0_2 = arith.constant 0 : index
    %c0_3 = arith.constant 0 : index
    %4 = vector.load %arg2[%c0_2, %c0_3] : memref<160x128xbf16, #tpu.memory_space<vmem>>, vector<32x128xbf16>
    %cst = arith.constant dense<0.000000e+00> : vector<16x128xf32>
    %5 = tpu.matmul %3, %4, %cst {dimension_numbers = #tpu.dot_dimension_numbers<[1], [0], [0], [1], [0, 0, 1, 1], [], []>} : vector<16x32xbf16>, vector<32x128xbf16>, vector<16x128xf32> -> vector<16x128xf32>
    %c0_4 = arith.constant 0 : index
    %c0_5 = arith.constant 0 : index
    %6 = vector.load %arg3[%c0_4, %c0_5] : memref<8x128xf32, #tpu.memory_space<vmem>>, vector<1x128xf32>
    %7 = vector.broadcast %6 : vector<1x128xf32> to vector<16x128xf32>
    %8 = arith.addf %5, %7 : vector<16x128xf32>
    %cst_6 = arith.constant 0.000000e+00 : f32
    %9 = vector.broadcast %cst_6 : f32 to vector<16x128xf32>
    %10 = arith.maximumf %8, %9 : vector<16x128xf32>
    %11 = arith.truncf %10 : vector<16x128xf32> to vector<16x128xbf16>
    %c32 = arith.constant 32 : index
    %c0_7 = arith.constant 0 : index
    %12 = vector.load %arg2[%c32, %c0_7] : memref<160x128xbf16, #tpu.memory_space<vmem>>, vector<128x128xbf16>
    %cst_8 = arith.constant dense<0.000000e+00> : vector<16x128xf32>
    %13 = tpu.matmul %11, %12, %cst_8 {dimension_numbers = #tpu.dot_dimension_numbers<[1], [0], [0], [1], [0, 0, 1, 1], [], []>} : vector<16x128xbf16>, vector<128x128xbf16>, vector<16x128xf32> -> vector<16x128xf32>
    %c1 = arith.constant 1 : index
    %c0_9 = arith.constant 0 : index
    %14 = vector.load %arg3[%c1, %c0_9] : memref<8x128xf32, #tpu.memory_space<vmem>>, vector<1x128xf32>
    %15 = vector.broadcast %14 : vector<1x128xf32> to vector<16x128xf32>
    %16 = arith.addf %13, %15 : vector<16x128xf32>
    %cst_10 = arith.constant 0.000000e+00 : f32
    %17 = vector.broadcast %cst_10 : f32 to vector<16x128xf32>
    %18 = arith.maximumf %16, %17 : vector<16x128xf32>
    %c16_i32 = arith.constant 16 : i32
    %19 = arith.muli %arg0, %c16_i32 : i32
    %20 = tpu.iota {dimensions = array<i32: 0>} : vector<16x128xi32>
    %21 = vector.broadcast %19 : i32 to vector<16x128xi32>
    %22 = arith.addi %21, %20 : vector<16x128xi32>
    %c8_i32 = arith.constant 8 : i32
    %23 = vector.broadcast %c8_i32 : i32 to vector<16x128xi32>
    %24 = arith.cmpi slt, %22, %23 : vector<16x128xi32>
    %cst_11 = arith.constant 0.000000e+00 : f32
    %25 = vector.broadcast %cst_11 : f32 to vector<16x128xf32>
    %26 = arith.select %24, %18, %25 : vector<16x128xi1>, vector<16x128xf32>
    %cst_12 = arith.constant dense<0xFF800000> : vector<128xf32>
    %27 = vector.multi_reduction <maximumf>, %26, %cst_12 [0] : vector<16x128xf32> to vector<128xf32>
    %28 = vector.shape_cast %27 : vector<128xf32> to vector<1x128xf32>
    %c0_13 = arith.constant 0 : index
    %c0_14 = arith.constant 0 : index
    %29 = vector.load %arg6[%c0_13, %c0_14] : memref<1x128xf32, #tpu.memory_space<vmem>>, vector<1x128xf32>
    %30 = arith.maximumf %29, %28 : vector<1x128xf32>
    %c0_15 = arith.constant 0 : index
    %c0_16 = arith.constant 0 : index
    %31 = vector.load %arg6[%c0_15, %c0_16] : memref<1x128xf32, #tpu.memory_space<vmem>>, vector<1x128xf32>
    tpu.vector_store %arg6[%c0_15, %c0_16], %30 {strides = array<i32>} : memref<1x128xf32, #tpu.memory_space<vmem>>, vector<1x128xf32>,
    %c0_i32_17 = arith.constant 0 : i32
    %32 = arith.cmpi eq, %arg0, %c0_i32_17 : i32
    %33 = arith.extui %32 : i1 to i32
    %c0_i32_18 = arith.constant 0 : i32
    %34 = arith.cmpi ne, %33, %c0_i32_18 : i32
    scf.if %34 {
      %c0_19 = arith.constant 0 : index
      %c0_20 = arith.constant 0 : index
      %35 = vector.load %arg6[%c0_19, %c0_20] : memref<1x128xf32, #tpu.memory_space<vmem>>, vector<1x128xf32>
      %36 = arith.truncf %35 : vector<1x128xf32> to vector<1x128xbf16>
      %c0_21 = arith.constant 0 : index
      %c0_22 = arith.constant 0 : index
      %37 = vector.load %arg4[%c0_21, %c0_22] : memref<128x128xbf16, #tpu.memory_space<vmem>>, vector<128x128xbf16>
      %cst_23 = arith.constant dense<0.000000e+00> : vector<1x128xf32>
      %38 = tpu.matmul %36, %37, %cst_23 {dimension_numbers = #tpu.dot_dimension_numbers<[1], [0], [0], [1], [0, 0, 1, 1], [], []>} : vector<1x128xbf16>, vector<128x128xbf16>, vector<1x128xf32> -> vector<1x128xf32>
      %c2 = arith.constant 2 : index
      %c0_24 = arith.constant 0 : index
      %39 = vector.load %arg3[%c2, %c0_24] : memref<8x128xf32, #tpu.memory_space<vmem>>, vector<1x128xf32>
      %40 = arith.addf %38, %39 : vector<1x128xf32>
      %41 = vector.shape_cast %40 : vector<1x128xf32> to vector<1x128xf32>
      %42 = vector.broadcast %41 : vector<1x128xf32> to vector<8x128xf32>
      %c0_25 = arith.constant 0 : index
      %c0_26 = arith.constant 0 : index
      %43 = vector.load %arg5[%c0_25, %c0_26] : memref<8x128xf32, #tpu.memory_space<vmem>>, vector<8x128xf32>
      tpu.vector_store %arg5[%c0_25, %c0_26], %42 {strides = array<i32>} : memref<8x128xf32, #tpu.memory_space<vmem>>, vector<8x128xf32>,
    } else {
    }
    return
  }
  func.func @transform_0(%arg0: i32) -> (i32, i32) {
    %c0_i32 = arith.constant 0 : i32
    %c0_i32_0 = arith.constant 0 : i32
    return %arg0, %c0_i32 : i32, i32
  }
  func.func @transform_1(%arg0: i32) -> (i32, i32) {
    %c0_i32 = arith.constant 0 : i32
    %c0_i32_0 = arith.constant 0 : i32
    %c0_i32_1 = arith.constant 0 : i32
    return %c0_i32, %c0_i32_0 : i32, i32
  }
  func.func @transform_2(%arg0: i32) -> (i32, i32) {
    %c0_i32 = arith.constant 0 : i32
    %c0_i32_0 = arith.constant 0 : i32
    %c0_i32_1 = arith.constant 0 : i32
    return %c0_i32, %c0_i32_0 : i32, i32
  }
  func.func @transform_3(%arg0: i32) -> (i32, i32) {
    %c0_i32 = arith.constant 0 : i32
    %c0_i32_0 = arith.constant 0 : i32
    %c0_i32_1 = arith.constant 0 : i32
    return %c0_i32, %c0_i32_0 : i32, i32
  }
  func.func @transform_4(%arg0: i32) -> (i32, i32) {
    %c0_i32 = arith.constant 0 : i32
    %c0_i32_0 = arith.constant 0 : i32
    %c0_i32_1 = arith.constant 0 : i32
    return %c0_i32, %c0_i32_0 : i32, i32
  }
}

</mosaic_0001>

<bundles_post_ra>
// kernel: card_selection_forward.1
= control target key start
LH: loop header
LB: loop body
LE: loop exit
PB: predicated region body
PF: predicated region fallthrough
CT: control target
= control target key end

     0   :  { %9 = vsyncpa [#allocation4], 0  ;;  %s618_s0 = inlined_call_operand.vmem [shape: bf16[16,32], index: 0, kind: input, shape index: {}]   ;;  %s619_s1 = inlined_call_operand.hbm [shape: bf16[160,128], index: 1, kind: input, shape index: {}]   ;;  %s620_s2 = inlined_call_operand.vmem [shape: f32[8,128], index: 2, kind: input, shape index: {}]   ;;  %s621_s3 = inlined_call_operand.hbm [shape: bf16[128,128], index: 3, kind: input, shape index: {}]   ;;  %s622_s4 = inlined_call_operand.vmem [shape: f32[8,128], index: 4, kind: output, shape index: {}]  }
   0x1   :  { %10 = vsyncpa [#allocation6], 0  ;;  %s541_s15 = smov [#allocation3]  }
   0x2   :  { %s18_s16 = sshll.u32 %s541_s15, 4  ;;  %s19_s16 = int_to_ptr.vmem [resolvable:$true] %s18_s16 }
   0x3   :  { %s505_s17 = scalar_lea.vmem %s19_s16, 1280  ;;  %p510_p1 = scmp.lt.s32.totalorder %s19_s16, %s19_s16 }
   0x4   :  { %p506_p0 = scmp.ne.s32.totalorder %s19_s16, %s505_s17  ;;  %p511_p2 = scmp.lt.s32.totalorder %s505_s17, %s505_s17 }
   0x6   :  { %p512_p3 = por %p511_p2, %p510_p1 }
   0x8   :  { %p513_p4 = pnand %p512_p3, %p506_p0 }
   0xa   :  { %516 = shalt.err (!%p513_p4)
}
   0xb   :  { %s542_s18 = smov 64   ;;  %s543_s19 = smov 4  }
   0xc   :  { %24 = dma.hbm_to_vmem [thread:$0]  %s619_s1, 1280, %s19_s16, [#allocation4], %s542_s18, %s542_s18, %s543_s19  }
   0xd   :  { %s544_s22 = smov [#allocation5]  }
   0xe   :  { %s32_s23 = sshll.u32 %s544_s22, 4  ;;  %s33_s23 = int_to_ptr.vmem [resolvable:$true] %s32_s23 }
   0xf   :  { %s525_s24 = scalar_lea.vmem %s33_s23, 1024  ;;  %p530_p6 = scmp.lt.s32.totalorder %s33_s23, %s33_s23 }
  0x10   :  { %p526_p5 = scmp.ne.s32.totalorder %s33_s23, %s525_s24  ;;  %p531_p7 = scmp.lt.s32.totalorder %s525_s24, %s525_s24 }
  0x12   :  { %p532_p8 = por %p531_p7, %p530_p6 }
  0x14   :  { %p533_p9 = pnand %p532_p8, %p526_p5 }
  0x16   :  { %536 = shalt.err (!%p533_p9)
}
  0x17   :  { %38 = dma.hbm_to_vmem [thread:$0]  %s621_s3, 1024, %s33_s23, [#allocation6], %s542_s18, %s542_s18, %s543_s19  }
  0x18   :  { %537 = dma.done.wait [#allocation4], 1280  }
  0x19   :  { %538 = vsyncadd [#allocation4], 4294966016 }
  0x1a   :  { %539 = dma.done.wait [#allocation6], 1024  }
  0x1b   :  { %540 = vsyncadd [#allocation6], 4294966272  ;;  %v545_v0 = vmov 0.0   ;;  %vm546_vm0 = vmmov 0   ;;  %v478_v1 = vld [vmem:[#allocation3 + $0x8] sm:$0xff]   ;;  %v479_v2 = vld [vmem:[#allocation3] sm:$0xff]   ;;  %v370_v48 = vlaneseq }
  0x1c   :  { %424 = vmatprep.subr.bf16.mxu0 %v545_v0  ;;  %50 = vst [vmem:[#allocation2] sm:$0x1] %v545_v0  ;;  %428 = vmatprep.mubr.msk.bf16.mxu0 %vm546_vm0, %v545_v0  ;;  %v481_v3 = vld [vmem:[#allocation3 + $0x48] sm:$0xff]   ;;  %v480_v4 = vld [vmem:[%s618_s0] sm:$0xff]   ;;  %vm79_vm1 = vcmask 261120   ;;  %v484_v7 = vld [vmem:[#allocation3 + $0x30] sm:$0xff]  }
  0x1d   :  { %432 = vmatprep.subr.bf16.mxu1 %v545_v0  ;;  %448 = vmatprep.mubr.msk.bf16.mxu1 %vm546_vm0, %v545_v0  ;;  %v482_v5 = vld [vmem:[#allocation3 + $0x40] sm:$0xff]   ;;  %v483_v6 = vld [vmem:[#allocation3 + $0x38] sm:$0xff]   ;;  %v485_v8 = vld [vmem:[#allocation3 + $0x28] sm:$0xff]   ;;  %v371_v49 = vshrl.u32 %v370_v48, 7 }
  0x1e   :  { %425 = vmatpush3.bf16.msra.mxu0 %v478_v1  ;;  %433 = vmatpush3.bf16.msra.mxu1 %v481_v3  ;;  %v486_v9 = vld [vmem:[#allocation3 + $0x20] sm:$0xff]   ;;  %v487_v10 = vld [vmem:[#allocation3 + $0x18] sm:$0xff]   ;;  %v488_v11 = vld [vmem:[#allocation3 + $0x10] sm:$0xff]  }
  0x1f   :  { %426 = vmatprep.subr.bf16.mxu0 %v545_v0  ;;  %434 = vmatprep.subr.bf16.mxu1 %v545_v0  ;;  %v381_v12 = vld [vmem:[%s620_s2] ss:$0 sm:$0xff]  ;;  %v489_v22 = vld [vmem:[#allocation5 + $0x38] sm:$0xff]   ;;  %v490_v23 = vld [vmem:[#allocation5 + $0x30] sm:$0xff]   ;;  %v372_v51 = vsub.s32 0, %v371_v49 }
  0x20   :  { %v491_v24 = vld [vmem:[#allocation5 + $0x28] sm:$0xff]   ;;  %v492_v25 = vld [vmem:[#allocation5 + $0x20] sm:$0xff]   ;;  %v493_v26 = vld [vmem:[#allocation5 + $0x18] sm:$0xff]  }
  0x21   :  { %v494_v27 = vld [vmem:[#allocation5 + $0x10] sm:$0xff]   ;;  %v495_v28 = vld [vmem:[#allocation5 + $0x8] sm:$0xff]   ;;  %v496_v29 = vld [vmem:[#allocation5] sm:$0xff]  }
  0x22   :  { %427 = vmatpush3.bf16.msra.mxu0 %v479_v2  ;;  %435 = vmatpush3.bf16.msra.mxu1 %v482_v5  ;;  %v386_v30 = vld [vmem:[%s620_s2 + $0x1] ss:$0 sm:$0xff]  ;;  %v281_v50 = vld [vmem:[%s620_s2 + $0x2] sm:$0x1] }
  0x23   :  { %452 = vmatprep.subr.bf16.mxu0 %v545_v0  ;;  %436 = vmatprep.subr.bf16.mxu1 %v545_v0  ;;  %v257_v43 = vld [vmem:[#allocation2] sm:$0x1] }
  0x25   :  { %429 = vmatmul.mubr.msk.bf16.vlgmr.msra.gmra.mxu0 %vm79_vm1, %v480_v4 }
  0x26   :  { %468 = vmatprep.mubr.msk.bf16.mxu0 %vm546_vm0, %v545_v0  ;;  %437 = vmatpush3.bf16.msra.mxu1 %v483_v6 }
  0x27   :  { %438 = vmatprep.subr.bf16.mxu1 %v545_v0  ;;  %453 = vmatpush3.bf16.msra.mxu0 %v489_v22 }
  0x28   :  { %454 = vmatprep.subr.bf16.mxu0 %v545_v0 }
  0x2a   :  { %439 = vmatpush3.bf16.msra.mxu1 %v484_v7 }
  0x2b   :  { %440 = vmatprep.subr.bf16.mxu1 %v545_v0  ;;  %455 = vmatpush3.bf16.msra.mxu0 %v490_v23 }
  0x2c   :  { %456 = vmatprep.subr.bf16.mxu0 %v545_v0 }
  0x2e   :  { %441 = vmatpush3.bf16.msra.mxu1 %v485_v8 }
  0x2f   :  { %442 = vmatprep.subr.bf16.mxu1 %v545_v0  ;;  %457 = vmatpush3.bf16.msra.mxu0 %v491_v24 }
  0x30   :  { %458 = vmatprep.subr.bf16.mxu0 %v545_v0 }
  0x32   :  { %443 = vmatpush3.bf16.msra.mxu1 %v486_v9 }
  0x33   :  { %444 = vmatprep.subr.bf16.mxu1 %v545_v0  ;;  %459 = vmatpush3.bf16.msra.mxu0 %v492_v25 }
  0x34   :  { %460 = vmatprep.subr.bf16.mxu0 %v545_v0 }
  0x36   :  { %445 = vmatpush3.bf16.msra.mxu1 %v487_v10 }
  0x37   :  { %446 = vmatprep.subr.bf16.mxu1 %v545_v0  ;;  %461 = vmatpush3.bf16.msra.mxu0 %v493_v26 }
  0x38   :  { %462 = vmatprep.subr.bf16.mxu0 %v545_v0 }
  0x3a   :  { %447 = vmatpush3.bf16.msra.mxu1 %v488_v11 }
  0x3b   :  { %463 = vmatpush3.bf16.msra.mxu0 %v494_v27 }
  0x3c   :  { %464 = vmatprep.subr.bf16.mxu0 %v545_v0 }
  0x3f   :  { %465 = vmatpush3.bf16.msra.mxu0 %v495_v28 }
  0x40   :  { %466 = vmatprep.subr.bf16.mxu0 %v545_v0 }
  0x43   :  { %467 = vmatpush3.bf16.msra.mxu0 %v496_v29 }
  0xe5   :  { %v117_v13 = vpop.f32.mrf.mxu0 }
  0xe6   :  { %v118_v15 = vadd.f32 %v381_v12, %v117_v13 }
  0xe7   :  { %v430_v14 = vpop.f32.mrf.mxu0 }
  0xe8   :  { %v124_v19 = vmax.f32 %v118_v15, 0.0 }
  0xe9   :  { %v120_v16 = vpop.f32.mrf.mxu0 }
  0xea   :  { %v121_v17 = vadd.f32 %v381_v12, %v120_v16 }
  0xeb   :  { %v431_v18 = vpop.f32.mrf.mxu0 }
  0xec   :  { %v125_v20 = vmax.f32 %v121_v17, 0.0 }
  0xee   :  { %v126_v21 = vpack.c.bf16 %v125_v20, %v124_v19 }
  0xf0   :  { %449 = vmatmul.mubr.bf16.vlgmr.msra.gmra.mxu1 %v126_v21 }
 0x1b0   :  { %v230_v31 = vpop.f32.mrf.mxu1 }
 0x1b1   :  { %v231_v32 = vadd.f32 %v386_v30, %v230_v31 }
 0x1b2   :  { %v450_v33 = vpop.f32.mrf.mxu1 }
 0x1b3   :  { %v237_v34 = vmax.f32 %v231_v32, 0.0 }
 0x1b4   :  { %v233_v35 = vpop.f32.mrf.mxu1 }
 0x1b5   :  { %v250_v36 = vmax.f32 %v237_v34, 0.0 }
 0x1b6   :  { %v451_v37 = vpop.f32.mrf.mxu1 }
 0x1b7   :  { %v251_v38 = vrot.slane %v250_v36, 4 }
 0x1b9   :  { %v252_v39 = vmax.f32 %v250_v36, %v251_v38 }
 0x1bb   :  { %v253_v40 = vrot.slane %v252_v39, 2 }
 0x1bd   :  { %v254_v41 = vmax.f32 %v252_v39, %v253_v40 }
 0x1bf   :  { %v255_v42 = vrot.slane %v254_v41, 1 }
 0x1c1   :  { %v256_v44 = vmax.f32 %v254_v41, %v255_v42 }
 0x1c3   :  { %v258_v45 = vmax.f32 %v257_v43, %v256_v44 }
 0x1c5   :  { %259 = vst [vmem:[#allocation2] sm:$0x1] %v258_v45 }
 0x1cc   :  { %v263_v46 = vld [vmem:[#allocation2] sm:$0x1] }
 0x1cd   :  { %v264_v47 = vpack.c.bf16 %v263_v46, %v263_v46 }
 0x1cf   :  { %469 = vmatmul.mubr.bf16.vlgmr.msra.gmra.mxu0 %v264_v47 }
 0x28f   :  { %v364_v52 = vpop.f32.mrf.mxu0 }
 0x290   :  { %v365_v53 = vadd.f32 %v364_v52, %v281_v50 }
 0x291   :  { %v470_v54 = vpop.f32.mrf.mxu0 }
 0x292   :  { %v373_v55 = vrot.slane %v365_v53, %v372_v51 }
 0x293   :  { %v367_v56 = vpop.f32.mrf.mxu0 }
 0x294   :  { %374 = vst [vmem:[%s622_s4] sm:$0xff] %v373_v55 }
 0x295   :  { %v471_v57 = vpop.f32.mrf.mxu0 }
 0x296   :  { %379 = vsyncpa [#allocation4], 1 }
 0x297   :  { %380 = vsyncpa [#allocation6], 1 }

</bundles_post_ra>
